<compile_context>
chip_gen: v7x
topology: tpu7x:2x2x1
jax: 0.10.0
libtpu: 0.0.40
codegen_flags: <defaults>
</compile_context>

<pallas_src>
import jax
import jax.numpy as jnp
from jax.experimental import pallas as pl
from jax.experimental.pallas import tpu as pltpu


def _round_up(x, m):
    return (x + m - 1) // m * m


def reflect_conv_forward(x_nchw, weight_oihw, bias, *, stride=2, pad=1):
    """Forward pass of reflect_conv: ReflectionPad2d(pad) then Conv2d(k, stride, padding=0)."""
    N, C_in, H, W = x_nchw.shape
    C_out, C_in_w, KH, KW = weight_oihw.shape
    assert C_in == C_in_w

    # ---- glue: reflection pad (matches nn.ReflectionPad2d semantics) ----
    x_pad = jnp.pad(x_nchw, ((0, 0), (0, 0), (pad, pad), (pad, pad)), mode="reflect")
    Hp, Wp = H + 2 * pad, W + 2 * pad
    H_out = (Hp - KH) // stride + 1
    W_out = (Wp - KW) // stride + 1
    HW = H_out * W_out
    KK = KH * KW
    K = KK * C_in
    M = N * HW

    # ---- glue: im2col, transposed so the long (N*HW) axis is the lane dim ----
    # TODO(synk): at realistic image sizes, avoid materializing the KKx-inflated
    # im2col tensor in HBM; DMA the padded NHWC image and build the 16 shifted
    # views with static slices inside the kernel instead.
    x_nhwc = jnp.transpose(x_pad, (0, 2, 3, 1))  # (N, Hp, Wp, C_in)
    cols = []
    for kh in range(KH):
        for kw in range(KW):
            sl = x_nhwc[:, kh:kh + stride * H_out:stride,
                           kw:kw + stride * W_out:stride, :]   # (N, H_out, W_out, C_in)
            cols.append(sl.reshape(N, HW, C_in))
    # (KK, N, HW, C_in) -> (KK, C_in, N, HW) -> (K, M); K ordering = kh, kw, C_in
    x_t = jnp.transpose(jnp.stack(cols, axis=0), (0, 3, 1, 2)).reshape(K, M)
    x_t = x_t.astype(jnp.bfloat16)

    # ---- glue: weights (O,I,KH,KW) -> (C_out, K) with the SAME K ordering ----
    w_t = jnp.transpose(weight_oihw, (0, 2, 3, 1)).reshape(C_out, K).astype(jnp.bfloat16)
    b_col = bias.reshape(C_out, 1).astype(jnp.float32)

    # ---- tiling over the fused N*HW axis (lane-dense tiles, multiple of 128) ----
    TM = min(_round_up(M, 128), 2048)
    M_padded = _round_up(M, TM)
    if M_padded != M:
        x_t = jnp.pad(x_t, ((0, 0), (0, M_padded - M)))
    num_tiles = M_padded // TM

    # ---- Pallas kernel: one fused MXU matmul + bias per lane-dense tile ----
    def conv_kernel(w_ref, x_ref, b_ref, o_ref):
        # w_ref: (C_out, K) bf16   x_ref: (K, TM) bf16   b_ref: (C_out, 1) f32
        acc = jnp.dot(w_ref[...], x_ref[...], preferred_element_type=jnp.float32)
        o_ref[...] = acc + b_ref[...]          # lane-dense (C_out, TM) store

    cost = pl.CostEstimate(
        flops=2 * M_padded * K * C_out,
        transcendentals=0,
        bytes_accessed=(x_t.size * 2            # bf16 patches
                        + w_t.size * 2          # bf16 weights
                        + b_col.size * 4        # f32 bias
                        + C_out * M_padded * 4  # f32 output
                        ),
    )

    out_t = pl.pallas_call(
        conv_kernel,
        out_shape=jax.ShapeDtypeStruct((C_out, M_padded), jnp.float32),
        grid=(num_tiles,),
        in_specs=[
            pl.BlockSpec((C_out, K), lambda m: (0, 0)),
            pl.BlockSpec((K, TM), lambda m: (0, m)),
            pl.BlockSpec((C_out, 1), lambda m: (0, 0)),
        ],
        out_specs=pl.BlockSpec((C_out, TM), lambda m: (0, m)),
        compiler_params=pltpu.CompilerParams(
            dimension_semantics=("parallel",),
            vmem_limit_bytes=32 * 1024 * 1024,
        ),
        cost_estimate=cost,
    )(w_t, x_t, b_col)

    # ---- glue: (C_out, N*HW) -> NCHW ----
    out = out_t[:, :M].reshape(C_out, N, H_out, W_out)
    return jnp.transpose(out, (1, 0, 2, 3))


if __name__ == "__main__":
    key = jax.random.PRNGKey(0)
    k_x, k_w, k_b = jax.random.split(key, 3)

    # small shapes consistent with the module: reflect_conv(in_channels=4, out_channels=8)
    N, C_in, H, W = 2, 4, 16, 16
    C_out, KH, KW = 8, 4, 4

    x = jax.random.normal(k_x, (N, C_in, H, W), jnp.float32)

    # deterministic PyTorch-style init: U(-1/sqrt(fan_in), 1/sqrt(fan_in))
    fan_in = C_in * KH * KW
    bound = 1.0 / (fan_in ** 0.5)
    weight = jax.random.uniform(k_w, (C_out, C_in, KH, KW), jnp.float32, -bound, bound)
    bias = jax.random.uniform(k_b, (C_out,), jnp.float32, -bound, bound)

    out = reflect_conv_forward(x, weight, bias)
    out = jax.block_until_ready(out)
    assert out.shape == (N, C_out, H // 2, W // 2)

    # reference check against XLA's conv (same reflection pad + VALID stride-2 conv).
    # Tolerance loosened vs the f32 version because kernel inputs are cast to bf16.
    x_pad = jnp.pad(x, ((0, 0), (0, 0), (1, 1), (1, 1)), mode="reflect")
    ref = jax.lax.conv_general_dilated(
        x_pad, weight, window_strides=(2, 2), padding="VALID",
        dimension_numbers=("NCHW", "OIHW", "NCHW")) + bias[None, :, None, None]
    assert jnp.allclose(out, ref, atol=5e-2, rtol=5e-2), "mismatch vs reference conv"

    print("KERNEL_OK")
</pallas_src>

<mosaic_0001>
module attributes {stable_mosaic.version = 11 : i64} {
  func.func @conv_kernel(%arg0: i32, %arg1: memref<8x64xbf16, #tpu.memory_space<vmem>>, %arg2: memref<64x128xbf16, #tpu.memory_space<vmem>>, %arg3: memref<8x1xf32, #tpu.memory_space<vmem>>, %arg4: memref<8x128xf32, #tpu.memory_space<vmem>>) attributes {dimension_semantics = [#tpu.dimension_semantics<parallel>], iteration_bounds = array<i64: 1>, scalar_prefetch = 0 : i64, scratch_operands = 0 : i64, tpu.core_type = #tpu.core_type<tc>, window_params = [{pipeline_mode = #tpu.pipeline_mode<synchronous>, transform_indices = @transform_0, window_bounds = array<i64: 8, 64>}, {transform_indices = @transform_1, window_bounds = array<i64: 64, 128>}, {pipeline_mode = #tpu.pipeline_mode<synchronous>, transform_indices = @transform_2, window_bounds = array<i64: 8, 1>}, {transform_indices = @transform_3, window_bounds = array<i64: 8, 128>}]} {
    %c0 = arith.constant 0 : index
    %c0_0 = arith.constant 0 : index
    %0 = vector.load %arg1[%c0, %c0_0] : memref<8x64xbf16, #tpu.memory_space<vmem>>, vector<8x64xbf16>
    %c0_1 = arith.constant 0 : index
    %c0_2 = arith.constant 0 : index
    %1 = vector.load %arg2[%c0_1, %c0_2] : memref<64x128xbf16, #tpu.memory_space<vmem>>, vector<64x128xbf16>
    %cst = arith.constant dense<0.000000e+00> : vector<8x128xf32>
    %2 = tpu.matmul %0, %1, %cst {dimension_numbers = #tpu.dot_dimension_numbers<[1], [0], [0], [1], [0, 0, 1, 1], [], []>} : vector<8x64xbf16>, vector<64x128xbf16>, vector<8x128xf32> -> vector<8x128xf32>
    %c0_3 = arith.constant 0 : index
    %c0_4 = arith.constant 0 : index
    %3 = vector.load %arg3[%c0_3, %c0_4] : memref<8x1xf32, #tpu.memory_space<vmem>>, vector<8x1xf32>
    %4 = vector.broadcast %3 : vector<8x1xf32> to vector<8x128xf32>
    %5 = arith.addf %2, %4 : vector<8x128xf32>
    %c0_5 = arith.constant 0 : index
    %c0_6 = arith.constant 0 : index
    %6 = vector.load %arg4[%c0_5, %c0_6] : memref<8x128xf32, #tpu.memory_space<vmem>>, vector<8x128xf32>
    tpu.vector_store %arg4[%c0_5, %c0_6], %5 {strides = array<i32>} : memref<8x128xf32, #tpu.memory_space<vmem>>, vector<8x128xf32>,
    return
  }
  func.func @transform_0(%arg0: i32) -> (i32, i32) {
    %c0_i32 = arith.constant 0 : i32
    %c0_i32_0 = arith.constant 0 : i32
    %c0_i32_1 = arith.constant 0 : i32
    return %c0_i32, %c0_i32_0 : i32, i32
  }
  func.func @transform_1(%arg0: i32) -> (i32, i32) {
    %c0_i32 = arith.constant 0 : i32
    %c0_i32_0 = arith.constant 0 : i32
    return %c0_i32, %arg0 : i32, i32
  }
  func.func @transform_2(%arg0: i32) -> (i32, i32) {
    %c0_i32 = arith.constant 0 : i32
    %c0_i32_0 = arith.constant 0 : i32
    %c0_i32_1 = arith.constant 0 : i32
    return %c0_i32, %c0_i32_0 : i32, i32
  }
  func.func @transform_3(%arg0: i32) -> (i32, i32) {
    %c0_i32 = arith.constant 0 : i32
    %c0_i32_0 = arith.constant 0 : i32
    return %c0_i32, %arg0 : i32, i32
  }
}

</mosaic_0001>

<bundles_post_ra>
// kernel: tpu_custom_call.1
= control target key start
LH: loop header
LB: loop body
LE: loop exit
PB: predicated region body
PF: predicated region fallthrough
CT: control target
= control target key end

     0   :  { %8 = vsyncpa [#allocation3], 0  ;;  %s268_s0 = inlined_call_operand.vmem [shape: bf16[8,64], index: 0, kind: input, shape index: {}]   ;;  %s269_s1 = inlined_call_operand.hbm [shape: bf16[64,128], index: 1, kind: input, shape index: {}]   ;;  %s270_s2 = inlined_call_operand.vmem [shape: f32[8,1], index: 2, kind: input, shape index: {}]   ;;  %s271_s3 = inlined_call_operand.hbm [shape: f32[8,128], index: 3, kind: output, shape index: {}]  }
   0x1   :  { %9 = vsyncpa [#allocation4], 0  ;;  %s211_s12 = smov [#allocation2]   ;;  %s163_s16 = scalar_lea.hbm %s269_s1, 512 }
   0x2   :  { %s17_s13 = sshll.u32 %s211_s12, 4  ;;  %p164_p0 = scmp.ne.s32.totalorder %s269_s1, %s163_s16  ;;  %s18_s13 = int_to_ptr.vmem [resolvable:$true] %s17_s13 }
   0x3   :  { %p167_p1 = scmp.lt.u32.totalorder %s163_s16, %s269_s1 }
   0x5   :  { %p169_p2 = pnand %p167_p1, %p164_p0 }
   0x7   :  { %172 = shalt.err (!%p169_p2)
}
   0x8   :  { %s173_s21 = scalar_lea.vmem %s18_s13, 512  ;;  %p178_p4 = scmp.lt.s32.totalorder %s18_s13, %s18_s13 }
   0x9   :  { %p174_p3 = scmp.ne.s32.totalorder %s18_s13, %s173_s21  ;;  %p179_p5 = scmp.lt.s32.totalorder %s173_s21, %s173_s21 }
   0xb   :  { %p180_p6 = por %p179_p5, %p178_p4 }
   0xd   :  { %p181_p7 = pnand %p180_p6, %p174_p3 }
   0xf   :  { %184 = shalt.err (!%p181_p7)
}
  0x10   :  { %s212_s22 = smov 64   ;;  %s213_s23 = smov 4  }
  0x11   :  { %23 = dma.hbm_to_vmem [thread:$0]  %s269_s1, 512, %s18_s13, [#allocation3], %s212_s22, %s212_s22, %s213_s23  }
  0x12   :  { %207 = dma.done.wait [#allocation3], 512  }
  0x13   :  { %208 = vsyncadd [#allocation3], 4294966784  ;;  %v214_v0 = vmov 0.0   ;;  %vm215_vm0 = vmmov 0   ;;  %v216_v1 = vmov 0   ;;  %v159_v2 = vld [vmem:[#allocation2] sm:$0xff]  }
  0x14   :  { %139 = vmatprep.subr.bf16.mxu0 %v214_v0  ;;  %147 = vmatprep.mubr.msk.bf16.mxu0 %vm215_vm0, %v214_v0  ;;  %v160_v3 = vld [vmem:[#allocation2 + $0x8] sm:$0xff]   ;;  %v39_v4 = vld [vmem:[%s270_s2] sm:$0xff]  ;;  %v161_v5 = vld [vmem:[#allocation2 + $0x10] sm:$0xff]   ;;  %vm69_vm1 = vcmask 523264   ;;  %s217_s29 = smov [#allocation5]  }
  0x15   :  { %158 = vset.pattern.permute.xlu0 %v216_v1  ;;  %140 = vmatpush3.bf16.msra.mxu0 %v159_v2  ;;  %v162_v6 = vld [vmem:[#allocation2 + $0x18] sm:$0xff]   ;;  %v30_v7 = vld [vmem:[%s268_s0] sm:$0xf]  ;;  %s120_s30 = sshll.u32 %s217_s29, 4  ;;  %s121_s30 = int_to_ptr.vmem [resolvable:$true] %s120_s30 }
  0x16   :  { %141 = vmatprep.subr.bf16.mxu0 %v214_v0  ;;  %42 = vperm.xlu0 %158, %v39_v4   ;;  %s185_s2 = scalar_lea.vmem %s121_s30, 128  ;;  %p190_p9 = scmp.lt.s32.totalorder %s121_s30, %s121_s30 }
  0x17   :  { %p186_p8 = scmp.ne.s32.totalorder %s121_s30, %s185_s2  ;;  %p191_p10 = scmp.lt.s32.totalorder %s185_s2, %s185_s2 }
  0x19   :  { %142 = vmatpush3.bf16.msra.mxu0 %v160_v3  ;;  %p192_p11 = por %p191_p10, %p190_p9 }
  0x1a   :  { %143 = vmatprep.subr.bf16.mxu0 %v214_v0 }
  0x1b   :  { %p193_p12 = pnand %p192_p11, %p186_p8 }
  0x1d   :  { %144 = vmatpush3.bf16.msra.mxu0 %v161_v5 }
  0x1e   :  { %145 = vmatprep.subr.bf16.mxu0 %v214_v0 }
  0x21   :  { %146 = vmatpush3.bf16.msra.mxu0 %v162_v6 }
  0x24   :  { %148 = vmatmul.mubr.msk.bf16.vlgmr.msra.gmra.mrb[0].mxu0 %vm69_vm1, %v30_v7 }
  0x95   :  { %v43_v8 = vpop.permute.xlu0 %42 }
  0xf7   :  { %v107_v9 = vpop.f32.mrb[0].mxu0 }
  0xf8   :  { %v108_v10 = vadd.f32 %v107_v9, %v43_v8  ;;  %v149_v11 = vpop.f32.mrb[1].mxu0 }
  0xf9   :  { %v110_v12 = vpop.f32.mrb[2].mxu0 }
  0xfa   :  { %113 = vst [vmem:[#allocation5] sm:$0xff] %v108_v10  ;;  %v150_v13 = vpop.f32.mrb[3].mxu0 }
  0xfb   :  { %196 = shalt.err (!%p193_p12)
}
  0xfc   :  { %s197_s5 = scalar_lea.hbm %s271_s3, 128 }
  0xfd   :  { %p198_p13 = scmp.ne.s32.totalorder %s271_s3, %s197_s5  ;;  %p201_p0 = scmp.lt.u32.totalorder %s197_s5, %s271_s3 }
  0xff   :  { %p203_p1 = pnand %p201_p0, %p198_p13 }
 0x101   :  { %206 = shalt.err (!%p203_p1)
}
 0x102   :  { %123 = dma.vmem_to_hbm [thread:$0]  %s121_s30, 128, %s271_s3, [#allocation4]  }
 0x103   :  { %209 = dma.done.wait [#allocation4], 128  }
 0x104   :  { %210 = vsyncadd [#allocation4], 4294967168 }
 0x105   :  { %127 = vsyncpa [#allocation3], 1 }
 0x106   :  { %128 = vsyncpa [#allocation4], 1 }

</bundles_post_ra>
